<compile_context>
chip_gen: v6e
topology: v6e:2x2x1
jax: 0.10.0
libtpu: 0.0.40
codegen_flags: <defaults>
</compile_context>

<pallas_src>
import functools

import jax
import jax.numpy as jnp
from jax.experimental import pallas as pl
from jax.experimental.pallas import tpu as pltpu

_LANES = 128


def _round_up(v, m):
    return ((v + m - 1) // m) * m


# ---------------------------------------------------------------------------
# Pass 1: running max of relu(x).
# Output is a (1, 128) partial-max row, resident in VMEM across the whole grid
# (same output block every step -> accumulator pattern, axis = "arbitrary").
# Padding with zeros is harmless: relu(x) >= 0, so 0 is the identity for max.
# ---------------------------------------------------------------------------
def _relu_max_kernel(x_ref, mx_ref):
    @pl.when(pl.program_id(0) == 0)
    def _():
        mx_ref[...] = jnp.zeros_like(mx_ref)

    a = jnp.maximum(x_ref[...], 0.0)                                   # ReLU (VPU)
    mx_ref[...] = jnp.maximum(mx_ref[...], jnp.max(a, axis=0, keepdims=True))


# ---------------------------------------------------------------------------
# Pass 2: fused ReLU + per-tensor uniform activation quantization.
# scale / inv_scale are precomputed scalars read from SMEM; each grid step is an
# independent lane-dense (tile_rows, 128) tile -> "parallel" (megacore on v7x).
# ---------------------------------------------------------------------------
def _relu_quant_kernel(params_ref, x_ref, o_ref, *, n_levels):
    scale = params_ref[0]          # SMEM scalar
    inv_scale = params_ref[1]      # SMEM scalar (precomputed reciprocal)
    a = jnp.maximum(x_ref[...], 0.0)                                   # ReLU
    q = jnp.clip(jnp.round(a * inv_scale), 0.0, n_levels)              # quant levels
    o_ref[...] = q * scale                                             # dequantized


def relu_quant_forward(x, *, q_bits_a=4, tile_rows=512):
    """ActivationFunction.forward: y = ActivationQuantizer(ReLU(x)).

    x: any-shape f32 tensor. Returns same shape/dtype.
    """
    orig_shape = x.shape
    orig_dtype = x.dtype
    total = x.size

    # Lane-dense (rows, 128) layout; rows padded to a multiple of the tile size.
    rows = _round_up(pl.cdiv(total, _LANES), 8)
    tr = min(_round_up(tile_rows, 8), rows)
    rows_pad = _round_up(rows, tr)
    num_tiles = rows_pad // tr

    flat = jnp.pad(x.reshape(-1).astype(jnp.float32),
                   (0, rows_pad * _LANES - total))
    x2d = flat.reshape(rows_pad, _LANES)

    # ---- pass 1: per-tensor max of relu(x) (Pallas reduce) -----------------
    mx_part = pl.pallas_call(
        _relu_max_kernel,
        out_shape=jax.ShapeDtypeStruct((1, _LANES), jnp.float32),
        grid=(num_tiles,),
        in_specs=[pl.BlockSpec((tr, _LANES), lambda i: (i, 0))],
        out_specs=pl.BlockSpec((1, _LANES), lambda i: (0, 0)),
        compiler_params=pltpu.CompilerParams(
            dimension_semantics=("arbitrary",)),
    )(x2d)

    # Tiny per-tensor scalar work, hoisted out of the hot loop (glue).
    n_levels = float(2 ** q_bits_a - 1)
    a_max = jnp.max(mx_part)
    scale = jnp.maximum(a_max / n_levels, jnp.float32(1e-8))
    inv_scale = 1.0 / scale
    params = jnp.stack([scale, inv_scale]).astype(jnp.float32)          # (2,)

    # ---- pass 2: fused ReLU + quantize, parallel over lane-dense tiles -----
    kernel = functools.partial(_relu_quant_kernel, n_levels=n_levels)
    y2d = pl.pallas_call(
        kernel,
        out_shape=jax.ShapeDtypeStruct((rows_pad, _LANES), jnp.float32),
        grid=(num_tiles,),
        in_specs=[
            pl.BlockSpec(memory_space=pltpu.MemorySpace.SMEM),   # [scale, inv_scale]
            pl.BlockSpec((tr, _LANES), lambda i: (i, 0)),        # x tile
        ],
        out_specs=pl.BlockSpec((tr, _LANES), lambda i: (i, 0)),
        compiler_params=pltpu.CompilerParams(
            dimension_semantics=("parallel",)),
    )(params, x2d)

    return y2d.reshape(-1)[:total].reshape(orig_shape).astype(orig_dtype)


def _reference(x, *, q_bits_a):
    """Plain-JAX reference (identical arithmetic ordering to the kernel)."""
    n_levels = float(2 ** q_bits_a - 1)
    a = jnp.maximum(x, 0.0)
    a_max = jnp.max(a)
    scale = jnp.maximum(a_max / n_levels, jnp.float32(1e-8))
    inv_scale = 1.0 / scale
    q = jnp.clip(jnp.round(a * inv_scale), 0.0, n_levels)
    return q * scale


if __name__ == "__main__":
    # Small shapes consistent with the module: batch=2, channels=4, spatial=16.
    N, C, H, W = 2, 4, 16, 16
    q_bits_a = 4

    key = jax.random.PRNGKey(0)
    x = jax.random.normal(key, (N, C, H, W), dtype=jnp.float32)

    # Default (single-tile) run.
    y = relu_quant_forward(x, q_bits_a=q_bits_a)
    y = jax.block_until_ready(y)

    y_ref = _reference(x, q_bits_a=q_bits_a)
    assert y.shape == x.shape, y.shape
    assert jnp.allclose(y, y_ref, atol=1e-5, rtol=1e-5), float(
        jnp.max(jnp.abs(y - y_ref)))
    assert bool(jnp.all(y >= 0.0))  # ReLU property preserved

    # Multi-tile run (exercises the grid accumulator + parallel tiles).
    y2 = relu_quant_forward(x, q_bits_a=q_bits_a, tile_rows=8)
    y2 = jax.block_until_ready(y2)
    assert jnp.allclose(y2, y_ref, atol=1e-5, rtol=1e-5), float(
        jnp.max(jnp.abs(y2 - y_ref)))

    print("KERNEL_OK")
</pallas_src>

<mosaic_0001>
module attributes {stable_mosaic.version = 11 : i64} {
  func.func @_relu_max_kernel(%arg0: i32, %arg1: memref<16x128xf32, #tpu.memory_space<vmem>>, %arg2: memref<1x128xf32, #tpu.memory_space<vmem>>) attributes {dimension_semantics = [#tpu.dimension_semantics<arbitrary>], iteration_bounds = array<i64: 1>, scalar_prefetch = 0 : i64, scratch_operands = 0 : i64, tpu.core_type = #tpu.core_type<tc>, window_params = [{transform_indices = @transform_0, window_bounds = array<i64: 16, 128>}, {pipeline_mode = #tpu.pipeline_mode<synchronous>, transform_indices = @transform_1, window_bounds = array<i64: 1, 128>}]} {
    %c0_i32 = arith.constant 0 : i32
    %0 = arith.cmpi eq, %arg0, %c0_i32 : i32
    %1 = arith.extui %0 : i1 to i32
    %c0_i32_0 = arith.constant 0 : i32
    %2 = arith.cmpi ne, %1, %c0_i32_0 : i32
    scf.if %2 {
      %cst_7 = arith.constant 0.000000e+00 : f32
      %11 = vector.broadcast %cst_7 : f32 to vector<1x128xf32>
      %c0_8 = arith.constant 0 : index
      %c0_9 = arith.constant 0 : index
      %12 = vector.load %arg2[%c0_8, %c0_9] : memref<1x128xf32, #tpu.memory_space<vmem>>, vector<1x128xf32>
      tpu.vector_store %arg2[%c0_8, %c0_9], %11 {strides = array<i32>} : memref<1x128xf32, #tpu.memory_space<vmem>>, vector<1x128xf32>,
    } else {
    }
    %c0 = arith.constant 0 : index
    %c0_1 = arith.constant 0 : index
    %3 = vector.load %arg1[%c0, %c0_1] : memref<16x128xf32, #tpu.memory_space<vmem>>, vector<16x128xf32>
    %cst = arith.constant 0.000000e+00 : f32
    %4 = vector.broadcast %cst : f32 to vector<16x128xf32>
    %5 = arith.maximumf %3, %4 : vector<16x128xf32>
    %c0_2 = arith.constant 0 : index
    %c0_3 = arith.constant 0 : index
    %6 = vector.load %arg2[%c0_2, %c0_3] : memref<1x128xf32, #tpu.memory_space<vmem>>, vector<1x128xf32>
    %cst_4 = arith.constant dense<0xFF800000> : vector<128xf32>
    %7 = vector.multi_reduction <maximumf>, %5, %cst_4 [0] : vector<16x128xf32> to vector<128xf32>
    %8 = vector.shape_cast %7 : vector<128xf32> to vector<1x128xf32>
    %9 = arith.maximumf %6, %8 : vector<1x128xf32>
    %c0_5 = arith.constant 0 : index
    %c0_6 = arith.constant 0 : index
    %10 = vector.load %arg2[%c0_5, %c0_6] : memref<1x128xf32, #tpu.memory_space<vmem>>, vector<1x128xf32>
    tpu.vector_store %arg2[%c0_5, %c0_6], %9 {strides = array<i32>} : memref<1x128xf32, #tpu.memory_space<vmem>>, vector<1x128xf32>,
    return
  }
  func.func @transform_0(%arg0: i32) -> (i32, i32) {
    %c0_i32 = arith.constant 0 : i32
    %c0_i32_0 = arith.constant 0 : i32
    return %arg0, %c0_i32 : i32, i32
  }
  func.func @transform_1(%arg0: i32) -> (i32, i32) {
    %c0_i32 = arith.constant 0 : i32
    %c0_i32_0 = arith.constant 0 : i32
    %c0_i32_1 = arith.constant 0 : i32
    return %c0_i32, %c0_i32_0 : i32, i32
  }
}

</mosaic_0001>

<bundles_post_ra>
// kernel: tpu_custom_call.1
= control target key start
LH: loop header
LB: loop body
LE: loop exit
PB: predicated region body
PF: predicated region fallthrough
CT: control target
= control target key end

     0   :  { %6 = vsyncpa [#allocation3], 0  ;;  %s127_s0 = inlined_call_operand.hbm [shape: f32[16,128], index: 0, kind: input, shape index: {}]   ;;  %s128_s1 = inlined_call_operand.hbm [shape: f32[1,128], index: 1, kind: output, shape index: {}]  }
   0x1   :  { %7 = vsyncpa [#allocation4], 0  ;;  %s106_s6 = smov [#allocation2]  }
   0x2   :  { %s13_s7 = sshll.u32 %s106_s6, 4  ;;  %s14_s7 = int_to_ptr.vmem [resolvable:$true] %s13_s7 }
   0x3   :  { %s70_s8 = scalar_lea.vmem %s14_s7, 256  ;;  %p75_p1 = scmp.lt.s32.totalorder %s14_s7, %s14_s7 }
   0x4   :  { %p71_p0 = scmp.ne.s32.totalorder %s14_s7, %s70_s8  ;;  %p76_p2 = scmp.lt.s32.totalorder %s70_s8, %s70_s8 }
   0x6   :  { %p77_p3 = por %p76_p2, %p75_p1 }
   0x8   :  { %p78_p4 = pnand %p77_p3, %p71_p0 }
   0xa   :  { %81 = shalt.err (!%p78_p4)
}
   0xb   :  { %s107_s9 = smov 128   ;;  %s108_s10 = smov 8  }
   0xc   :  { %19 = dma.hbm_to_vmem [thread:$0]  %s127_s0, 256, %s14_s7, [#allocation3], %s107_s9, %s107_s9, %s108_s10  }
   0xd   :  { %102 = dma.done.wait [#allocation3], 256  }
   0xe   :  { %103 = vsyncadd [#allocation3], 4294967040  ;;  %v109_v0 = vmov 0.0   ;;  %v28_v1 = vld [vmem:[#allocation2] sm:$0xff]  ;;  %v29_v2 = vld [vmem:[#allocation2 + $0x8] sm:$0xff]  ;;  %s110_s13 = smov [#allocation5]  }
   0xf   :  { %27 = vst [vmem:[#allocation5] sm:$0x1] %v109_v0  ;;  %v30_v3 = vmax.f32 %v28_v1, 0.0  ;;  %v31_v4 = vmax.f32 %v29_v2, 0.0  ;;  %s48_s14 = sshll.u32 %s110_s13, 4  ;;  %s49_s14 = int_to_ptr.vmem [resolvable:$true] %s48_s14 }
  0x10   :  { %s82_s0 = scalar_lea.vmem %s49_s14, 16  ;;  %s86_s15 = scalar_lea.vmem %s49_s14, 32 }
  0x11   :  { %v33_v5 = vmax.f32 %v30_v3, %v31_v4  ;;  %p83_p5 = scmp.ne.s32.totalorder %s49_s14, %s82_s0  ;;  %p87_p6 = scmp.lt.s32.totalorder %s49_s14, %s49_s14 }
  0x12   :  { %p88_p7 = scmp.lt.s32.totalorder %s86_s15, %s82_s0 }
  0x13   :  { %v34_v6 = vrot.slane %v33_v5, 4 }
  0x14   :  { %p89_p8 = por %p88_p7, %p87_p6 }
  0x15   :  { %v35_v7 = vmax.f32 %v33_v5, %v34_v6 }
  0x16   :  { %v32_v11 = vld [vmem:[#allocation5] sm:$0x1]  ;;  %p90_p9 = pnand %p89_p8, %p83_p5 }
  0x17   :  { %v36_v8 = vrot.slane %v35_v7, 2 }
  0x19   :  { %v37_v9 = vmax.f32 %v35_v7, %v36_v8 }
  0x1b   :  { %v38_v10 = vrot.slane %v37_v9, 1 }
  0x1d   :  { %v39_v12 = vmax.f32 %v37_v9, %v38_v10 }
  0x1f   :  { %v40_v13 = vmax.f32 %v32_v11, %v39_v12 }
  0x21   :  { %41 = vst [vmem:[#allocation5] sm:$0x1] %v40_v13 }
  0x22   :  { %93 = shalt.err (!%p90_p9)
}
  0x23   :  { %51 = dma.vmem_to_hbm [thread:$0]  %s49_s14, 16, %s128_s1, [#allocation4]  }
  0x24   :  { %104 = dma.done.wait [#allocation4], 16  }
  0x25   :  { %105 = vsyncadd [#allocation4], 4294967280 }
  0x26   :  { %55 = vsyncpa [#allocation3], 1 }
  0x27   :  { %56 = vsyncpa [#allocation4], 1 }

</bundles_post_ra>
